<compile_context>
chip_gen: v7x
topology: tpu7x:2x2x1
jax: 0.10.0
libtpu: 0.0.40
codegen_flags: <defaults>
</compile_context>

<pallas_src>
import functools

import jax
import jax.numpy as jnp
from jax.experimental import pallas as pl
from jax.experimental.pallas import tpu as pltpu

_LANE = 128
_MAX_GATHER_ROWS = 32          # cap on unrolled per-step row-gather DMAs


def _vmem_budget_bytes():
    """Physical VMEM capacity (per core), with a v7x-safe fallback."""
    try:
        info = pltpu.get_tpu_info()
        cap = getattr(info, "vmem_capacity_bytes", None)
        if cap:
            return int(cap)
    except Exception:
        pass
    return 64 * 1024 * 1024


# ----------------------------------------------------------------------------
# Path A: multi-row batch blocks, manual double-buffered gather of X[perm].
# ----------------------------------------------------------------------------
def _mixup_multirow_kernel(perm_ref, x_ref, coef_ref, x_hbm_ref, o_ref,
                           xp_buf, sems, *, bs, b_tile):
    # perm_ref : (bs,) int32 in SMEM (scalar prefetch) -> gather source rows
    # x_ref    : identity rows of this batch tile (auto-pipelined VMEM block)
    # coef_ref : (b_tile, 1) f32 per-row coefficients (auto-pipelined VMEM block)
    # x_hbm_ref: whole X left in HBM (memory_space=pl.ANY), manual-DMA source
    # xp_buf   : (2, b_tile, ...) VMEM double buffer for the permuted rows
    # sems     : (2, b_tile) DMA semaphores
    step = pl.program_id(0)
    n_steps = pl.num_programs(0)
    slot = step % 2

    def issue(bt, s):
        # Start the gather of the b_tile permuted source rows of batch-tile bt.
        for k in range(b_tile):                       # static unroll
            idx = jnp.minimum(bt * b_tile + k, bs - 1)  # clamp ragged last tile
            pltpu.make_async_copy(x_hbm_ref.at[perm_ref[idx]],
                                  xp_buf.at[s, k],
                                  sems.at[s, k]).start()

    @pl.when(step == 0)
    def _():
        issue(0, 0)                                   # prime slot 0

    @pl.when(step + 1 < n_steps)
    def _():
        issue(step + 1, (step + 1) % 2)               # prefetch next batch tile

    for k in range(b_tile):                           # wait for this tile's rows
        pltpu.make_async_copy(x_hbm_ref.at[0], xp_buf.at[slot, k],
                              sems.at[slot, k]).wait()

    x = x_ref[...].astype(jnp.float32)
    xp = xp_buf[slot].astype(jnp.float32)
    c = coef_ref[...].astype(jnp.float32).reshape((b_tile,) + (1,) * (x.ndim - 1))
    # xp + c*(x - xp) == c*x + (1-c)*xp   (one fewer vmul; OOB rows are masked
    # on the output write, so garbage lanes/rows never reach HBM)
    o_ref[...] = (xp + c * (x - xp)).astype(o_ref.dtype)


# ----------------------------------------------------------------------------
# Path B (fallback): per-sample-row blocks with feature tiling; used only when
# a single sample row exceeds the per-block VMEM cap.  Gather of the permuted
# row is done by the pipeline itself via a scalar-prefetch-driven index_map.
# ----------------------------------------------------------------------------
def _mixup_rowgather_kernel(perm_ref, coef_ref, x_ref, xp_ref, o_ref):
    i = pl.program_id(0)
    c = coef_ref[i]                                   # f32 scalar from SMEM
    x = x_ref[...].astype(jnp.float32)
    xp = xp_ref[...].astype(jnp.float32)
    o_ref[...] = (xp + c * (x - xp)).astype(o_ref.dtype)


def _mixup_feature_tiled(arr2d, perm, coeffs, block_cap_bytes, budget):
    bs, d = arr2d.shape
    dtype = arr2d.dtype
    itemsize = jnp.dtype(dtype).itemsize

    pad = (-d) % _LANE
    if pad:
        # TODO(synk): mask the ragged tail in-kernel instead of pad+slice; this
        # branch is only reached when one sample row alone exceeds the VMEM cap.
        arr2d = jnp.pad(arr2d, ((0, 0), (0, pad)))
    dp = d + pad
    r = dp // _LANE
    x3 = arr2d.reshape(bs, r, _LANE)

    sub = max(8, 32 // itemsize)                      # sublane packing per dtype
    max_rt = max(sub, (block_cap_bytes // (_LANE * itemsize)) // sub * sub)
    r_tile = r if r <= max_rt else max_rt
    n_f = pl.cdiv(r, r_tile)

    block_bytes = r_tile * _LANE * itemsize
    vmem_limit = int(min(budget, max(32 * 1024 * 1024, 8 * block_bytes)))

    out = pl.pallas_call(
        _mixup_rowgather_kernel,
        out_shape=jax.ShapeDtypeStruct((bs, r, _LANE), dtype),
        grid_spec=pltpu.PrefetchScalarGridSpec(
            num_scalar_prefetch=2,                    # perm, coeffs -> SMEM
            grid=(bs, n_f),
            in_specs=[
                pl.BlockSpec((1, r_tile, _LANE), lambda i, j, p, c: (i, j, 0)),
                pl.BlockSpec((1, r_tile, _LANE), lambda i, j, p, c: (p[i], j, 0)),
            ],
            out_specs=pl.BlockSpec((1, r_tile, _LANE), lambda i, j, p, c: (i, j, 0)),
        ),
        compiler_params=pltpu.CompilerParams(
            dimension_semantics=("parallel", "arbitrary"),
            vmem_limit_bytes=vmem_limit,
        ),
    )(perm, coeffs, x3, x3)

    out2d = out.reshape(bs, dp)
    return out2d[:, :d] if pad else out2d


# ----------------------------------------------------------------------------
# Dispatcher: out[i] = coeffs[i]*arr[i] + (1-coeffs[i])*arr[perm[i]]
# ----------------------------------------------------------------------------
def _mixup_rows_pallas(arr2d, perm, coeffs, *, block_cap_bytes=None):
    bs, d = arr2d.shape
    dtype = arr2d.dtype
    itemsize = jnp.dtype(dtype).itemsize
    row_bytes = d * itemsize

    budget = _vmem_budget_bytes()
    if block_cap_bytes is None:
        # ~6 live blocks (in/out/gather, double-buffered) + slack must fit VMEM:
        # 8 MiB blocks on 128 MiB parts (v5e/v6e), ~6.4 MiB on 64 MiB (v7x).
        block_cap_bytes = min(8 * 1024 * 1024, budget // 10)

    sub = max(8, 32 // itemsize)                      # 8 f32 / 16 bf16 / 32 int8
    max_rows = min(block_cap_bytes // max(row_bytes, 1), _MAX_GATHER_ROWS)

    if max_rows >= bs:
        b_tile = bs
    elif max_rows >= sub:
        max_bt = (max_rows // sub) * sub
        n_tiles = -(-bs // max_bt)
        b_tile = -(-(-(-bs // n_tiles)) // sub) * sub  # balanced, sub-aligned
    else:
        # Rows too large for multi-row blocks -> per-row, feature-tiled fallback.
        return _mixup_feature_tiled(arr2d, perm, coeffs, block_cap_bytes, budget)

    n_b = pl.cdiv(bs, b_tile)

    # Lane-dense layout: (bs, r, 128) when the row is 128-divisible (dense DMA
    # destinations); otherwise keep the raw (bs, d) layout (full-extent last
    # dim) -- no pad, no slice, still at the 3-HBM-pass roofline.
    if d % _LANE == 0:
        r = d // _LANE
        x_in = arr2d.reshape(bs, r, _LANE)
        row_block = (r, _LANE)
        blk = (b_tile, r, _LANE)
        idx_map = lambda b, p: (b, 0, 0)
    else:
        x_in = arr2d
        row_block = (d,)
        blk = (b_tile, d)
        idx_map = lambda b, p: (b, 0)

    coef2d = coeffs.reshape(bs, 1).astype(jnp.float32)

    padded_block_bytes = (-(-b_tile // 8) * 8) * (-(-d // _LANE) * _LANE) * itemsize
    vmem_limit = int(min(budget, max(32 * 1024 * 1024, 8 * padded_block_bytes)))

    kernel = functools.partial(_mixup_multirow_kernel, bs=bs, b_tile=b_tile)

    out = pl.pallas_call(
        kernel,
        out_shape=jax.ShapeDtypeStruct(x_in.shape, dtype),
        grid_spec=pltpu.PrefetchScalarGridSpec(
            num_scalar_prefetch=1,                    # perm -> SMEM (gather indices)
            grid=(n_b,),
            in_specs=[
                pl.BlockSpec(blk, idx_map),                      # identity rows
                pl.BlockSpec((b_tile, 1), lambda b, p: (b, 0)),  # per-row coeffs
                pl.BlockSpec(memory_space=pl.ANY),               # whole X (HBM)
            ],
            out_specs=pl.BlockSpec(blk, idx_map),
            scratch_shapes=[
                pltpu.VMEM((2, b_tile) + row_block, dtype),      # gather dbl-buf
                pltpu.SemaphoreType.DMA((2, b_tile)),
            ],
        ),
        compiler_params=pltpu.CompilerParams(
            # Sequential grid: step i prefetches step i+1's permuted rows, so the
            # batch axis must NOT be split across cores.
            # TODO(synk): on v7x, split the batch across the two TensorCores via
            # an explicit leading core axis (each core priming its own slot).
            dimension_semantics=("arbitrary",),
            vmem_limit_bytes=vmem_limit,
        ),
    )(perm, x_in, coef2d, x_in)

    return out.reshape(bs, d)


# ----------------------------------------------------------------------------
# Public forward (mirrors Mixup.forward; weight / teacher_preds are unused).
# Also returns perm / coeffs so the caller (and the test) can verify.
# ----------------------------------------------------------------------------
@functools.partial(jax.jit,
                   static_argnames=("mix_beta", "min_pallas_bytes", "block_cap_bytes"))
def mixup_forward(X, Y, key, mix_beta=1.0, min_pallas_bytes=4 * 1024 * 1024,
                  block_cap_bytes=None):
    bs = X.shape[0]
    kp, kc = jax.random.split(key)
    perm = jax.random.permutation(kp, bs).astype(jnp.int32)
    coeffs = jax.random.beta(kc, mix_beta, mix_beta, (bs,)).astype(jnp.float32)

    x2d = X.reshape(bs, -1)
    total_bytes = x2d.size * jnp.dtype(X.dtype).itemsize
    if total_bytes < min_pallas_bytes:
        # Small-input bypass (per review): a pallas_call is pure overhead here.
        cX = coeffs.reshape((bs,) + (1,) * (X.ndim - 1))
        xp = jnp.take(X, perm, axis=0).astype(jnp.float32)
        x_mix = (xp + cX * (X.astype(jnp.float32) - xp)).astype(X.dtype)
    else:
        x_mix = _mixup_rows_pallas(
            x2d, perm, coeffs, block_cap_bytes=block_cap_bytes).reshape(X.shape)

    # Y is (bs, n_classes) -- tiny; blend in plain jnp (per review).
    cY = coeffs[:, None]
    yp = jnp.take(Y, perm, axis=0).astype(jnp.float32)
    y_mix = (yp + cY * (Y.astype(jnp.float32) - yp)).astype(Y.dtype)

    return x_mix, y_mix, perm, coeffs


# ----------------------------------------------------------------------------
# Reference + checks
# ----------------------------------------------------------------------------
def _reference(X, Y, perm, coeffs):
    bs = X.shape[0]
    cX = coeffs.reshape((bs,) + (1,) * (X.ndim - 1))
    cY = coeffs.reshape(bs, 1)
    Xf = X.astype(jnp.float32)
    Yf = Y.astype(jnp.float32)
    Xm = cX * Xf + (1.0 - cX) * Xf[perm]
    Ym = cY * Yf + (1.0 - cY) * Yf[perm]
    return Xm, Ym


def _check(X, Y, kmix, mix_beta, atol, rtol, **kw):
    Xm, Ym, perm, coeffs = mixup_forward(X, Y, kmix, mix_beta=mix_beta, **kw)
    jax.block_until_ready((Xm, Ym))
    Xr, Yr = _reference(X, Y, perm, coeffs)
    assert Xm.shape == X.shape and Xm.dtype == X.dtype
    assert Ym.shape == Y.shape and Ym.dtype == Y.dtype
    assert jnp.allclose(Xm.astype(jnp.float32), Xr, atol=atol, rtol=rtol), "X mixup mismatch"
    assert jnp.allclose(Ym.astype(jnp.float32), Yr, atol=atol, rtol=rtol), "Y mixup mismatch"


if __name__ == "__main__":
    key = jax.random.PRNGKey(0)
    ks = jax.random.split(key, 8)
    mix_beta = 1.0
    n_classes = 8

    # 1) 4-D NCHW input, f32, d % 128 == 0 -> Path A, dense (bs, r, 128) layout.
    X = jax.random.normal(ks[0], (2, 4, 16, 16), dtype=jnp.float32)
    Y = jax.random.uniform(ks[1], (2, n_classes), dtype=jnp.float32)
    _check(X, Y, ks[2], mix_beta, 1e-5, 1e-5, min_pallas_bytes=0)

    # 2) bf16 I/O through the same path (f32 compute, bf16 stores).
    _check(X.astype(jnp.bfloat16), Y.astype(jnp.bfloat16), ks[2], mix_beta,
           5e-2, 5e-2, min_pallas_bytes=0)

    # 3) 3-D input with ragged rows (d % 128 != 0) -> Path A, (bs, d) layout, no pad.
    X3 = jax.random.normal(ks[3], (4, 8, 40), dtype=jnp.float32)
    Y3 = jax.random.uniform(ks[4], (4, n_classes), dtype=jnp.float32)
    _check(X3, Y3, ks[5], mix_beta, 1e-5, 1e-5, min_pallas_bytes=0)

    # 4) Multi-batch-tile path (forced small block cap): exercises the manual
    #    double-buffered permuted-row gather and the ragged last batch tile.
    X4 = jax.random.normal(ks[6], (20, 4, 16, 16), dtype=jnp.float32)
    Y4 = jax.random.uniform(ks[7], (20, n_classes), dtype=jnp.float32)
    _check(X4, Y4, ks[2], mix_beta, 1e-5, 1e-5,
           min_pallas_bytes=0, block_cap_bytes=32 * 1024)

    # 5) Path B fallback (single row exceeds the forced cap), ragged d.
    _check(X3, Y3, ks[5], mix_beta, 1e-5, 1e-5,
           min_pallas_bytes=0, block_cap_bytes=1024)

    # 6) Default config: small-input bypass (plain XLA path).
    _check(X, Y, ks[2], mix_beta, 1e-5, 1e-5)

    print("KERNEL_OK")
</pallas_src>

<mosaic_0001>
module attributes {stable_mosaic.version = 11 : i64} {
  func.func @_mixup_multirow_kernel(%arg0: i32, %arg1: memref<2xi32, #tpu.memory_space<smem>>, %arg2: memref<2x8x128xf32, #tpu.memory_space<vmem>>, %arg3: memref<2x1xf32, #tpu.memory_space<vmem>>, %arg4: memref<2x8x128xf32, #tpu.memory_space<any>>, %arg5: memref<2x8x128xf32, #tpu.memory_space<vmem>>, %arg6: memref<2x2x8x128xf32, #tpu.memory_space<vmem>>, %arg7: memref<2x2x!tpu.dma_semaphore, #tpu.memory_space<semaphore_mem>>) attributes {dimension_semantics = [#tpu.dimension_semantics<arbitrary>], iteration_bounds = array<i64: 1>, scalar_prefetch = 1 : i64, scratch_operands = 2 : i64, tpu.core_type = #tpu.core_type<tc>, window_params = [{transform_indices = @transform_0, window_bounds = array<i64: 2, 8, 128>}, {transform_indices = @transform_1, window_bounds = array<i64: 2, 1>}, {}, {transform_indices = @transform_3, window_bounds = array<i64: 2, 8, 128>}]} {
    %c2_i32 = arith.constant 2 : i32
    %c0_i32 = arith.constant 0 : i32
    %0 = arith.cmpi eq, %c2_i32, %c0_i32 : i32
    %c1_i32 = arith.constant 1 : i32
    %1 = arith.select %0, %c1_i32, %c2_i32 : i32
    %2 = arith.remsi %arg0, %1 : i32
    %c0_i32_0 = arith.constant 0 : i32
    %3 = arith.cmpi ne, %2, %c0_i32_0 : i32
    %c0_i32_1 = arith.constant 0 : i32
    %4 = arith.cmpi slt, %2, %c0_i32_1 : i32
    %c0_i32_2 = arith.constant 0 : i32
    %5 = arith.cmpi slt, %1, %c0_i32_2 : i32
    %6 = arith.xori %4, %5 : i1
    %7 = arith.andi %6, %3 : i1
    %8 = arith.addi %2, %1 : i32
    %9 = arith.select %7, %8, %2 : i32
    %c0_i32_3 = arith.constant 0 : i32
    %10 = arith.cmpi eq, %arg0, %c0_i32_3 : i32
    %11 = arith.extui %10 : i1 to i32
    %c0_i32_4 = arith.constant 0 : i32
    %12 = arith.cmpi ne, %11, %c0_i32_4 : i32
    scf.if %12 {
      %c0_i32_32 = arith.constant 0 : i32
      %c1_i32_33 = arith.constant 1 : i32
      %40 = arith.minsi %c0_i32_32, %c1_i32_33 : i32
      %41 = arith.index_cast %40 : i32 to index
      %42 = memref.load %arg1[%41] : memref<2xi32, #tpu.memory_space<smem>>
      %c0_i32_34 = arith.constant 0 : i32
      %c0_i32_35 = arith.constant 0 : i32
      %c0_i32_36 = arith.constant 0 : i32
      %c0_i32_37 = arith.constant 0 : i32
      %c0_i32_38 = arith.constant 0 : i32
      %c0_i32_39 = arith.constant 0 : i32
      %43 = tpu.memref_slice %arg4[%42, %c0_i32_38, %c0_i32_39] : memref<2x8x128xf32, #tpu.memory_space<any>> -> memref<1x8x128xf32, #tpu.memory_space<any>>
      %44 = tpu.memref_squeeze %43 : memref<1x8x128xf32, #tpu.memory_space<any>> -> memref<8x128xf32, #tpu.memory_space<any>>
      %c0_i32_40 = arith.constant 0 : i32
      %c0_i32_41 = arith.constant 0 : i32
      %45 = tpu.memref_slice %arg6[%c0_i32_34, %c0_i32_35, %c0_i32_40, %c0_i32_41] : memref<2x2x8x128xf32, #tpu.memory_space<vmem>> -> memref<1x1x8x128xf32, #tpu.memory_space<vmem>>
      %46 = tpu.memref_squeeze %45 : memref<1x1x8x128xf32, #tpu.memory_space<vmem>> -> memref<8x128xf32, #tpu.memory_space<vmem>>
      %47 = tpu.memref_slice %arg7[%c0_i32_36, %c0_i32_37] : memref<2x2x!tpu.dma_semaphore, #tpu.memory_space<semaphore_mem>> -> memref<1x1x!tpu.dma_semaphore, #tpu.memory_space<semaphore_mem>>
      %48 = tpu.memref_squeeze %47 : memref<1x1x!tpu.dma_semaphore, #tpu.memory_space<semaphore_mem>> -> memref<!tpu.dma_semaphore, #tpu.memory_space<semaphore_mem>>
      tpu.enqueue_dma source(%44 : memref<8x128xf32, #tpu.memory_space<any>>) target(%46 : memref<8x128xf32, #tpu.memory_space<vmem>>) target_semaphore(%48 : memref<!tpu.dma_semaphore, #tpu.memory_space<semaphore_mem>>)
      %c1_i32_42 = arith.constant 1 : i32
      %c1_i32_43 = arith.constant 1 : i32
      %49 = arith.minsi %c1_i32_42, %c1_i32_43 : i32
      %50 = arith.index_cast %49 : i32 to index
      %51 = memref.load %arg1[%50] : memref<2xi32, #tpu.memory_space<smem>>
      %c0_i32_44 = arith.constant 0 : i32
      %c1_i32_45 = arith.constant 1 : i32
      %c0_i32_46 = arith.constant 0 : i32
      %c1_i32_47 = arith.constant 1 : i32
      %c0_i32_48 = arith.constant 0 : i32
      %c0_i32_49 = arith.constant 0 : i32
      %52 = tpu.memref_slice %arg4[%51, %c0_i32_48, %c0_i32_49] : memref<2x8x128xf32, #tpu.memory_space<any>> -> memref<1x8x128xf32, #tpu.memory_space<any>>
      %53 = tpu.memref_squeeze %52 : memref<1x8x128xf32, #tpu.memory_space<any>> -> memref<8x128xf32, #tpu.memory_space<any>>
      %c0_i32_50 = arith.constant 0 : i32
      %c0_i32_51 = arith.constant 0 : i32
      %54 = tpu.memref_slice %arg6[%c0_i32_44, %c1_i32_45, %c0_i32_50, %c0_i32_51] : memref<2x2x8x128xf32, #tpu.memory_space<vmem>> -> memref<1x1x8x128xf32, #tpu.memory_space<vmem>>
      %55 = tpu.memref_squeeze %54 : memref<1x1x8x128xf32, #tpu.memory_space<vmem>> -> memref<8x128xf32, #tpu.memory_space<vmem>>
      %56 = tpu.memref_slice %arg7[%c0_i32_46, %c1_i32_47] : memref<2x2x!tpu.dma_semaphore, #tpu.memory_space<semaphore_mem>> -> memref<1x1x!tpu.dma_semaphore, #tpu.memory_space<semaphore_mem>>
      %57 = tpu.memref_squeeze %56 : memref<1x1x!tpu.dma_semaphore, #tpu.memory_space<semaphore_mem>> -> memref<!tpu.dma_semaphore, #tpu.memory_space<semaphore_mem>>
      tpu.enqueue_dma source(%53 : memref<8x128xf32, #tpu.memory_space<any>>) target(%55 : memref<8x128xf32, #tpu.memory_space<vmem>>) target_semaphore(%57 : memref<!tpu.dma_semaphore, #tpu.memory_space<semaphore_mem>>)
    } else {
    }
    %c1_i32_5 = arith.constant 1 : i32
    %13 = arith.addi %arg0, %c1_i32_5 : i32
    %c1_i32_6 = arith.constant 1 : i32
    %14 = arith.cmpi slt, %13, %c1_i32_6 : i32
    %15 = arith.extui %14 : i1 to i32
    %c0_i32_7 = arith.constant 0 : i32
    %16 = arith.cmpi ne, %15, %c0_i32_7 : i32
    scf.if %16 {
      %c1_i32_32 = arith.constant 1 : i32
      %40 = arith.addi %arg0, %c1_i32_32 : i32
      %c1_i32_33 = arith.constant 1 : i32
      %41 = arith.addi %arg0, %c1_i32_33 : i32
      %c2_i32_34 = arith.constant 2 : i32
      %c0_i32_35 = arith.constant 0 : i32
      %42 = arith.cmpi eq, %c2_i32_34, %c0_i32_35 : i32
      %c1_i32_36 = arith.constant 1 : i32
      %43 = arith.select %42, %c1_i32_36, %c2_i32_34 : i32
      %44 = arith.remsi %41, %43 : i32
      %c0_i32_37 = arith.constant 0 : i32
      %45 = arith.cmpi ne, %44, %c0_i32_37 : i32
      %c0_i32_38 = arith.constant 0 : i32
      %46 = arith.cmpi slt, %44, %c0_i32_38 : i32
      %c0_i32_39 = arith.constant 0 : i32
      %47 = arith.cmpi slt, %43, %c0_i32_39 : i32
      %48 = arith.xori %46, %47 : i1
      %49 = arith.andi %48, %45 : i1
      %50 = arith.addi %44, %43 : i32
      %51 = arith.select %49, %50, %44 : i32
      %c2_i32_40 = arith.constant 2 : i32
      %52 = arith.muli %40, %c2_i32_40 : i32
      %c0_i32_41 = arith.constant 0 : i32
      %53 = arith.addi %52, %c0_i32_41 : i32
      %c1_i32_42 = arith.constant 1 : i32
      %54 = arith.minsi %53, %c1_i32_42 : i32
      %55 = arith.index_cast %54 : i32 to index
      %56 = memref.load %arg1[%55] : memref<2xi32, #tpu.memory_space<smem>>
      %c0_i32_43 = arith.constant 0 : i32
      %c0_i32_44 = arith.constant 0 : i32
      %c0_i32_45 = arith.constant 0 : i32
      %c0_i32_46 = arith.constant 0 : i32
      %57 = tpu.memref_slice %arg4[%56, %c0_i32_45, %c0_i32_46] : memref<2x8x128xf32, #tpu.memory_space<any>> -> memref<1x8x128xf32, #tpu.memory_space<any>>
      %58 = tpu.memref_squeeze %57 : memref<1x8x128xf32, #tpu.memory_space<any>> -> memref<8x128xf32, #tpu.memory_space<any>>
      %c0_i32_47 = arith.constant 0 : i32
      %c0_i32_48 = arith.constant 0 : i32
      %59 = tpu.memref_slice %arg6[%51, %c0_i32_43, %c0_i32_47, %c0_i32_48] : memref<2x2x8x128xf32, #tpu.memory_space<vmem>> -> memref<1x1x8x128xf32, #tpu.memory_space<vmem>>
      %60 = tpu.memref_squeeze %59 : memref<1x1x8x128xf32, #tpu.memory_space<vmem>> -> memref<8x128xf32, #tpu.memory_space<vmem>>
      %61 = tpu.memref_slice %arg7[%51, %c0_i32_44] : memref<2x2x!tpu.dma_semaphore, #tpu.memory_space<semaphore_mem>> -> memref<1x1x!tpu.dma_semaphore, #tpu.memory_space<semaphore_mem>>
      %62 = tpu.memref_squeeze %61 : memref<1x1x!tpu.dma_semaphore, #tpu.memory_space<semaphore_mem>> -> memref<!tpu.dma_semaphore, #tpu.memory_space<semaphore_mem>>
      tpu.enqueue_dma source(%58 : memref<8x128xf32, #tpu.memory_space<any>>) target(%60 : memref<8x128xf32, #tpu.memory_space<vmem>>) target_semaphore(%62 : memref<!tpu.dma_semaphore, #tpu.memory_space<semaphore_mem>>)
      %c2_i32_49 = arith.constant 2 : i32
      %63 = arith.muli %40, %c2_i32_49 : i32
      %c1_i32_50 = arith.constant 1 : i32
      %64 = arith.addi %63, %c1_i32_50 : i32
      %c1_i32_51 = arith.constant 1 : i32
      %65 = arith.minsi %64, %c1_i32_51 : i32
      %66 = arith.index_cast %65 : i32 to index
      %67 = memref.load %arg1[%66] : memref<2xi32, #tpu.memory_space<smem>>
      %c1_i32_52 = arith.constant 1 : i32
      %c1_i32_53 = arith.constant 1 : i32
      %c0_i32_54 = arith.constant 0 : i32
      %c0_i32_55 = arith.constant 0 : i32
      %68 = tpu.memref_slice %arg4[%67, %c0_i32_54, %c0_i32_55] : memref<2x8x128xf32, #tpu.memory_space<any>> -> memref<1x8x128xf32, #tpu.memory_space<any>>
      %69 = tpu.memref_squeeze %68 : memref<1x8x128xf32, #tpu.memory_space<any>> -> memref<8x128xf32, #tpu.memory_space<any>>
      %c0_i32_56 = arith.constant 0 : i32
      %c0_i32_57 = arith.constant 0 : i32
      %70 = tpu.memref_slice %arg6[%51, %c1_i32_52, %c0_i32_56, %c0_i32_57] : memref<2x2x8x128xf32, #tpu.memory_space<vmem>> -> memref<1x1x8x128xf32, #tpu.memory_space<vmem>>
      %71 = tpu.memref_squeeze %70 : memref<1x1x8x128xf32, #tpu.memory_space<vmem>> -> memref<8x128xf32, #tpu.memory_space<vmem>>
      %72 = tpu.memref_slice %arg7[%51, %c1_i32_53] : memref<2x2x!tpu.dma_semaphore, #tpu.memory_space<semaphore_mem>> -> memref<1x1x!tpu.dma_semaphore, #tpu.memory_space<semaphore_mem>>
      %73 = tpu.memref_squeeze %72 : memref<1x1x!tpu.dma_semaphore, #tpu.memory_space<semaphore_mem>> -> memref<!tpu.dma_semaphore, #tpu.memory_space<semaphore_mem>>
      tpu.enqueue_dma source(%69 : memref<8x128xf32, #tpu.memory_space<any>>) target(%71 : memref<8x128xf32, #tpu.memory_space<vmem>>) target_semaphore(%73 : memref<!tpu.dma_semaphore, #tpu.memory_space<semaphore_mem>>)
    } else {
    }
    %c0_i32_8 = arith.constant 0 : i32
    %c0_i32_9 = arith.constant 0 : i32
    %c0_i32_10 = arith.constant 0 : i32
    %c0_i32_11 = arith.constant 0 : i32
    %c0_i32_12 = arith.constant 0 : i32
    %17 = tpu.memref_slice %arg4[%c0_i32_8, %c0_i32_11, %c0_i32_12] : memref<2x8x128xf32, #tpu.memory_space<any>> -> memref<1x8x128xf32, #tpu.memory_space<any>>
    %18 = tpu.memref_squeeze %17 : memref<1x8x128xf32, #tpu.memory_space<any>> -> memref<8x128xf32, #tpu.memory_space<any>>
    %c0_i32_13 = arith.constant 0 : i32
    %c0_i32_14 = arith.constant 0 : i32
    %19 = tpu.memref_slice %arg6[%9, %c0_i32_9, %c0_i32_13, %c0_i32_14] : memref<2x2x8x128xf32, #tpu.memory_space<vmem>> -> memref<1x1x8x128xf32, #tpu.memory_space<vmem>>
    %20 = tpu.memref_squeeze %19 : memref<1x1x8x128xf32, #tpu.memory_space<vmem>> -> memref<8x128xf32, #tpu.memory_space<vmem>>
    %21 = tpu.memref_slice %arg7[%9, %c0_i32_10] : memref<2x2x!tpu.dma_semaphore, #tpu.memory_space<semaphore_mem>> -> memref<1x1x!tpu.dma_semaphore, #tpu.memory_space<semaphore_mem>>
    %22 = tpu.memref_squeeze %21 : memref<1x1x!tpu.dma_semaphore, #tpu.memory_space<semaphore_mem>> -> memref<!tpu.dma_semaphore, #tpu.memory_space<semaphore_mem>>
    tpu.wait_dma2 semaphore(%22 : memref<!tpu.dma_semaphore, #tpu.memory_space<semaphore_mem>>) src(%18 : memref<8x128xf32, #tpu.memory_space<any>>) dst(%20 : memref<8x128xf32, #tpu.memory_space<vmem>>)
    %c0_i32_15 = arith.constant 0 : i32
    %c1_i32_16 = arith.constant 1 : i32
    %c1_i32_17 = arith.constant 1 : i32
    %c0_i32_18 = arith.constant 0 : i32
    %c0_i32_19 = arith.constant 0 : i32
    %23 = tpu.memref_slice %arg4[%c0_i32_15, %c0_i32_18, %c0_i32_19] : memref<2x8x128xf32, #tpu.memory_space<any>> -> memref<1x8x128xf32, #tpu.memory_space<any>>
    %24 = tpu.memref_squeeze %23 : memref<1x8x128xf32, #tpu.memory_space<any>> -> memref<8x128xf32, #tpu.memory_space<any>>
    %c0_i32_20 = arith.constant 0 : i32
    %c0_i32_21 = arith.constant 0 : i32
    %25 = tpu.memref_slice %arg6[%9, %c1_i32_16, %c0_i32_20, %c0_i32_21] : memref<2x2x8x128xf32, #tpu.memory_space<vmem>> -> memref<1x1x8x128xf32, #tpu.memory_space<vmem>>
    %26 = tpu.memref_squeeze %25 : memref<1x1x8x128xf32, #tpu.memory_space<vmem>> -> memref<8x128xf32, #tpu.memory_space<vmem>>
    %27 = tpu.memref_slice %arg7[%9, %c1_i32_17] : memref<2x2x!tpu.dma_semaphore, #tpu.memory_space<semaphore_mem>> -> memref<1x1x!tpu.dma_semaphore, #tpu.memory_space<semaphore_mem>>
    %28 = tpu.memref_squeeze %27 : memref<1x1x!tpu.dma_semaphore, #tpu.memory_space<semaphore_mem>> -> memref<!tpu.dma_semaphore, #tpu.memory_space<semaphore_mem>>
    tpu.wait_dma2 semaphore(%28 : memref<!tpu.dma_semaphore, #tpu.memory_space<semaphore_mem>>) src(%24 : memref<8x128xf32, #tpu.memory_space<any>>) dst(%26 : memref<8x128xf32, #tpu.memory_space<vmem>>)
    %c0 = arith.constant 0 : index
    %c0_22 = arith.constant 0 : index
    %c0_23 = arith.constant 0 : index
    %29 = vector.load %arg2[%c0, %c0_22, %c0_23] : memref<2x8x128xf32, #tpu.memory_space<vmem>>, vector<2x8x128xf32>
    %30 = arith.index_cast %9 : i32 to index
    %c0_24 = arith.constant 0 : index
    %c0_25 = arith.constant 0 : index
    %c0_26 = arith.constant 0 : index
    %31 = vector.load %arg6[%30, %c0_24, %c0_25, %c0_26] : memref<2x2x8x128xf32, #tpu.memory_space<vmem>>, vector<1x2x8x128xf32>
    %32 = vector.shape_cast %31 : vector<1x2x8x128xf32> to vector<2x8x128xf32>
    %c0_27 = arith.constant 0 : index
    %c0_28 = arith.constant 0 : index
    %33 = vector.load %arg3[%c0_27, %c0_28] : memref<2x1xf32, #tpu.memory_space<vmem>>, vector<2x1xf32>
    %34 = vector.shape_cast %33 : vector<2x1xf32> to vector<2x1x1xf32>
    %35 = arith.subf %29, %32 : vector<2x8x128xf32>
    %36 = vector.broadcast %34 : vector<2x1x1xf32> to vector<2x8x128xf32>
    %37 = arith.mulf %36, %35 : vector<2x8x128xf32>
    %38 = arith.addf %32, %37 : vector<2x8x128xf32>
    %c0_29 = arith.constant 0 : index
    %c0_30 = arith.constant 0 : index
    %c0_31 = arith.constant 0 : index
    %39 = vector.load %arg5[%c0_29, %c0_30, %c0_31] : memref<2x8x128xf32, #tpu.memory_space<vmem>>, vector<2x8x128xf32>
    tpu.vector_store %arg5[%c0_29, %c0_30, %c0_31], %38 {strides = array<i32>} : memref<2x8x128xf32, #tpu.memory_space<vmem>>, vector<2x8x128xf32>,
    return
  }
  func.func @transform_0(%arg0: i32, %arg1: memref<2xi32, #tpu.memory_space<smem>>) -> (i32, i32, i32) {
    %c0_i32 = arith.constant 0 : i32
    %c0_i32_0 = arith.constant 0 : i32
    %c0_i32_1 = arith.constant 0 : i32
    return %arg0, %c0_i32, %c0_i32_0 : i32, i32, i32
  }
  func.func @transform_1(%arg0: i32, %arg1: memref<2xi32, #tpu.memory_space<smem>>) -> (i32, i32) {
    %c0_i32 = arith.constant 0 : i32
    %c0_i32_0 = arith.constant 0 : i32
    return %arg0, %c0_i32 : i32, i32
  }
  func.func @transform_3(%arg0: i32, %arg1: memref<2xi32, #tpu.memory_space<smem>>) -> (i32, i32, i32) {
    %c0_i32 = arith.constant 0 : i32
    %c0_i32_0 = arith.constant 0 : i32
    %c0_i32_1 = arith.constant 0 : i32
    return %arg0, %c0_i32, %c0_i32_0 : i32, i32, i32
  }
}

</mosaic_0001>

<bundles_post_ra>
// kernel: mixup_forward.25
= control target key start
LH: loop header
LB: loop body
LE: loop exit
PB: predicated region body
PF: predicated region fallthrough
CT: control target
= control target key end

     0   :  { %s481_s0 = inlined_call_operand.vmem [shape: s32[2], index: 0, kind: input, shape index: {}]   ;;  %s482_s1 = inlined_call_operand.vmem [shape: f32[2,8,128], index: 1, kind: input, shape index: {}, may-alias: {1,3}]   ;;  %s483_s2 = inlined_call_operand.vmem [shape: f32[2,1], index: 2, kind: input, shape index: {}]   ;;  %s484_s3 = inlined_call_operand.vmem [shape: f32[2,8,128], index: 3, kind: input, shape index: {}, may-alias: {1,3}]   ;;  %s485_s4 = inlined_call_operand.vmem [shape: f32[2,8,128], index: 4, kind: output, shape index: {}]  }
   0x1   :  { %s9_s17 = sshll.u32 %s481_s0, 4  ;;  %s10_s17 = int_to_ptr.vmem [resolvable:$true] %s9_s17 }
   0x2   :  { %s411_s18 = scalar_lea.vmem %s10_s17, 16  ;;  %p416_p1 = scmp.lt.s32.totalorder %s10_s17, %s10_s17 }
   0x3   :  { %p412_p0 = scmp.ne.s32.totalorder %s10_s17, %s411_s18  ;;  %p417_p2 = scmp.lt.s32.totalorder %s411_s18, %s411_s18 }
   0x5   :  { %p418_p3 = por %p417_p2, %p416_p1 }
   0x7   :  { %p419_p4 = pnand %p418_p3, %p412_p0 }
   0x9   :  { %422 = shalt.err (!%p419_p4)  }
   0xa   :  { %s429_s19 = smov [#allocation5]  }
   0xb   :  { %12 = dma.vmem_to_smem %s10_s17, 16, %s429_s19, [#allocation4] }
   0xc   :  { %423 = dma.done.wait [#allocation4], 16 }
   0xd   :  { %424 = vsyncadd [#allocation4], 4294967280 }
   0xe   :  { %14 = sfence }
   0xf   :  { %s31_s20 = sld [smem:[#allocation5]] }
  0x15   :  { %s395_s21 = sshll.u32 %s31_s20, 3 }
  0x16   :  { %s33_s24 = scalar_lea.vmem %s484_s3, %s395_s21 }
  0x17   :  { %v66_v0 = vld [vmem:[%s33_s24] sm:$0xff] }
  0x18   :  { %75 = vsyncadd [#allocation3], 128  ;;  %s396_s0 = sld [smem:[#allocation5 + $0x1]] }
  0x1e   :  { %s397_s25 = sshll.u32 %s396_s0, 3 }
  0x1f   :  { %s78_s28 = scalar_lea.vmem %s484_s3, %s397_s25 }
  0x20   :  { %v113_v1 = vld [vmem:[%s78_s28] sm:$0xff] }
  0x21   :  { %122 = vsyncadd [#allocation3 + $0x1], 128 }
  0x22   :  { %425 = dma.done.wait [#allocation3], 128 }
  0x23   :  { %426 = vsyncadd [#allocation3], 4294967168 }
  0x24   :  { %427 = dma.done.wait [#allocation3 + $0x1], 128 }
  0x25   :  { %428 = vsyncadd [#allocation3 + $0x1], 4294967168  ;;  %v272_v2 = vlaneseq  ;;  %v430_v3 = vmov 0   ;;  %v431_v4 = vmov 1966171168   ;;  %v253_v16 = vld [vmem:[%s482_s1] sm:$0xff] }
  0x26   :  { %410 = vset.pattern.permute.xlu0 %v430_v3  ;;  %v270_v5 = vunpack.c.l.s4 %v431_v4  ;;  %v402_v10 = vld.sshfl [vmem:[%s483_s2] sm:$0x11 pattern:$0x75316420]  ;;  %v283_v17 = vsub.f32 %v253_v16, %v66_v0  ;;  %v254_v18 = vld [vmem:[%s482_s1 + $0x8] sm:$0xff] }
  0x27   :  { %v273_v6 = vshrl.u32 %v272_v2, 7  ;;  %v268_v12 = vcombine.high %v402_v10, %v402_v10  ;;  %v284_v21 = vsub.f32 %v254_v18, %v113_v1 }
  0x28   :  { %v271_v7 = vunpack.c.0.s8 %v270_v5 }
  0x29   :  { %v287_v9 = vsub.s32 0, %v273_v6 }
  0x2a   :  { %v274_v8 = vsub.s32 %v271_v7, %v273_v6 }
  0x2c   :  { %v275_v11 = vrot.slane %v402_v10, %v274_v8  ;;  %v282_v14 = vrot.slane %v268_v12, %v274_v8 }
  0x2e   :  { %v288_v13 = vrot.slane %v275_v11, %v287_v9  ;;  %v292_v15 = vrot.slane %v282_v14, %v287_v9 }
  0x30   :  { %294 = vperm.xlu0 %410, %v288_v13  }
  0x34   :  { %298 = vperm.xlu0 %410, %v292_v15  }
  0xaf   :  { %v295_v19 = vpop.permute.xlu0 %294 }
  0xb0   :  { %v301_v20 = vmul.f32 %v295_v19, %v283_v17 }
  0xb2   :  { %v303_v22 = vadd.f32 %v301_v20, %v66_v0 }
  0xb3   :  { %v299_v23 = vpop.permute.xlu0 %298 }
  0xb4   :  { %305 = vst [vmem:[%s485_s4] sm:$0xff] %v303_v22  ;;  %v302_v24 = vmul.f32 %v299_v23, %v284_v21 }
  0xb6   :  { %v304_v25 = vadd.f32 %v302_v24, %v113_v1 }
  0xb8   :  { %306 = vst [vmem:[%s485_s4 + $0x8] sm:$0xff] %v304_v25 }
  0xb9   :  { %311 = vsyncmov [#allocation3] }
  0xbc   :  { %s312_s11 = vpop.sfrf %311 }
  0xbd   :  { %p403_p5 = scmp.ne.s32.totalorder %s312_s11, 0 }
  0xbf   :  { %316 = shalt.err (%p403_p5)  }
  0xc0   :  { %318 = vsyncmov [#allocation3 + $0x1] }
  0xc3   :  { %s319_s1 = vpop.sfrf %318 }
  0xc4   :  { %p404_p6 = scmp.ne.s32.totalorder %s319_s1, 0 }
  0xc6   :  { %323 = shalt.err (%p404_p6)  }
  0xc7   :  { %325 = vsyncmov [#allocation3 + $0x2] }
  0xca   :  { %s326_s12 = vpop.sfrf %325 }
  0xcb   :  { %p405_p7 = scmp.ne.s32.totalorder %s326_s12, 0 }
  0xcd   :  { %330 = shalt.err (%p405_p7)  }
  0xce   :  { %332 = vsyncmov [#allocation3 + $0x3] }
  0xd1   :  { %s333_s13 = vpop.sfrf %332 }
  0xd2   :  { %p406_p8 = scmp.ne.s32.totalorder %s333_s13, 0 }
  0xd4   :  { %337 = shalt.err (%p406_p8)  }

</bundles_post_ra>
